<compile_context>
chip_gen: v6e
topology: v6e:2x2x1
jax: 0.10.0
libtpu: 0.0.40
codegen_flags: <defaults>
</compile_context>

<pallas_src>
import functools
import math

import jax
import jax.numpy as jnp
from jax.experimental import pallas as pl
from jax.experimental.pallas import tpu as pltpu


# ------------------------------------------------------------------ helpers --

def _round_up(x, m):
    return (x + m - 1) // m * m


def _vmem_capacity_bytes():
    """Physical VMEM per core (generation aware), with a conservative default."""
    try:
        cap = getattr(pltpu.get_tpu_info(), "vmem_capacity_bytes", None)
        if cap:
            return int(cap)
    except Exception:
        pass
    return 64 << 20  # v7x-sized fallback; always safe on v5e / v6e as well


def _sublane(dtype):
    # Native sublane packing: 8 for 32-bit, 16 for bf16, 32 for 8-bit dtypes.
    return {4: 8, 2: 16, 1: 32}.get(jnp.dtype(dtype).itemsize, 8)


def _choose_tiles(R, S, dtype):
    """Jointly pick (row_tile, lane_tile) for the streaming kernels.

    Keeps blocks lane-dense and ~0.5-4 MiB, uses the full spatial extent as a
    single block when that is cheap (dropping the reduction grid axis), and
    keeps >=2 row blocks when possible so both v7x TensorCores get work.  No
    padding is ever required: ragged edges use cdiv grids (+ lane masking in
    the reduce kernel); out-of-bounds stores are dropped by Pallas.
    """
    item = jnp.dtype(dtype).itemsize
    sub = _sublane(dtype)
    target = 2 << 20                                    # ~2 MiB blocks
    if S * item * sub <= (4 << 20):
        tile_s = S                                      # whole spatial extent
    else:
        tile_s = 1024                                   # lane-dense streaming tile

    if R <= sub:
        row_tile = R                                    # single full-extent block
    else:
        rows_fit = max(sub, (target // max(tile_s * item, 1)) // sub * sub)
        row_tile = min(_round_up(R, sub), rows_fit)
        if row_tile >= R:                               # ensure >=2 row blocks
            row_tile = max(sub, _round_up((R + 1) // 2, sub))
    return row_tile, tile_s


def _stream_vmem_limit(block_bytes, cap):
    need = 2 * sum(block_bytes) + (2 << 20)             # double-buffered + slack
    return int(min(int(0.85 * cap), max(8 << 20, 2 * need)))


# ------------------------------------------------------------------ kernels --

def _excite(sum_v, sum_s, inv_sv, inv_ss, wsqv, wsqs, bsq, wv, bv, ws, bs):
    """Column-form squeeze/excitation MLP for one batch element (all f32).

    sum_v: (Cv, 1) spatial sums, sum_s: (Cs, 1).  Returns f32 gate columns
    (Cv, 1) and (Cs, 1).  The mean scaling (1/S) is folded in here as a
    compile-time constant, so the wrapper never materializes means.
    """
    exc = (jnp.dot(wsqv, sum_v * inv_sv, preferred_element_type=jnp.float32)
           + jnp.dot(wsqs, sum_s * inv_ss, preferred_element_type=jnp.float32)
           + bsq)
    exc = jnp.maximum(exc, 0.0)                                   # ReLU
    gate_v = jax.nn.sigmoid(
        jnp.dot(wv, exc, preferred_element_type=jnp.float32) + bv)
    gate_s = jax.nn.sigmoid(
        jnp.dot(ws, exc, preferred_element_type=jnp.float32) + bs)
    return gate_v, gate_s


def _fused_kernel(vis_ref, sk_ref, wsqv_ref, wsqs_ref, bsq_ref,
                  wv_ref, bv_ref, ws_ref, bs_ref,
                  out_v_ref, out_s_ref, *, inv_sv, inv_ss):
    """One batch element fully resident in VMEM: squeeze + MLP + gating."""
    vis = vis_ref[...]                                            # (Cv, Sv)
    sk = sk_ref[...]                                              # (Cs, Ss)
    sum_v = jnp.sum(vis.astype(jnp.float32), axis=-1, keepdims=True)
    sum_s = jnp.sum(sk.astype(jnp.float32), axis=-1, keepdims=True)
    gate_v, gate_s = _excite(sum_v, sum_s, inv_sv, inv_ss,
                             wsqv_ref[...], wsqs_ref[...], bsq_ref[...],
                             wv_ref[...], bv_ref[...], ws_ref[...], bs_ref[...])
    out_v_ref[...] = (vis * gate_v).astype(out_v_ref.dtype)       # f32 gate
    out_s_ref[...] = (sk * gate_s).astype(out_s_ref.dtype)


def _row_sum_kernel(x_ref, sum_ref, *, true_s, tile_s):
    """Per-row f32 sums over the streamed (lane) spatial axis."""
    j = pl.program_id(1)

    @pl.when(j == 0)
    def _():
        sum_ref[...] = jnp.zeros_like(sum_ref)

    x = x_ref[...].astype(jnp.float32)
    if true_s % tile_s:                     # ragged tail: mask garbage lanes
        lane = jax.lax.broadcasted_iota(jnp.int32, x.shape, 1)
        x = jnp.where(lane < (true_s - j * tile_s), x, 0.0)
    sum_ref[...] += jnp.sum(x, axis=-1, keepdims=True)


def _gate_mlp_kernel(sumv_ref, sums_ref, wsqv_ref, wsqs_ref, bsq_ref,
                     wv_ref, bv_ref, ws_ref, bs_ref,
                     gate_v_ref, gate_s_ref, *, inv_sv, inv_ss):
    gate_v, gate_s = _excite(sumv_ref[...], sums_ref[...], inv_sv, inv_ss,
                             wsqv_ref[...], wsqs_ref[...], bsq_ref[...],
                             wv_ref[...], bv_ref[...], ws_ref[...], bs_ref[...])
    gate_v_ref[...] = gate_v
    gate_s_ref[...] = gate_s


def _gate_mul_kernel(gate_ref, x_ref, o_ref):
    """Streaming per-(batch, channel) gating; f32 gate, input-dtype store."""
    o_ref[...] = (x_ref[...] * gate_ref[...]).astype(o_ref.dtype)


# ----------------------------------------------------------- pallas drivers --

def _row_sums(x2d, row_tile, tile_s, cap):
    R, S = x2d.shape
    blk_in = row_tile * tile_s * x2d.dtype.itemsize
    blk_out = row_tile * 4
    return pl.pallas_call(
        functools.partial(_row_sum_kernel, true_s=S, tile_s=tile_s),
        out_shape=jax.ShapeDtypeStruct((R, 1), jnp.float32),
        grid=(pl.cdiv(R, row_tile), pl.cdiv(S, tile_s)),
        in_specs=[pl.BlockSpec((row_tile, tile_s), lambda i, j: (i, j))],
        out_specs=pl.BlockSpec((row_tile, 1), lambda i, j: (i, 0)),
        compiler_params=pltpu.CompilerParams(
            dimension_semantics=("parallel", "arbitrary"),
            vmem_limit_bytes=_stream_vmem_limit((blk_in, blk_out), cap)),
    )(x2d)


def _apply_gate(x2d, gate_col, row_tile, tile_s, cap):
    R, S = x2d.shape
    blk = row_tile * tile_s * x2d.dtype.itemsize
    return pl.pallas_call(
        _gate_mul_kernel,
        out_shape=jax.ShapeDtypeStruct((R, S), x2d.dtype),
        grid=(pl.cdiv(R, row_tile), pl.cdiv(S, tile_s)),
        in_specs=[pl.BlockSpec((row_tile, 1), lambda i, j: (i, 0)),
                  pl.BlockSpec((row_tile, tile_s), lambda i, j: (i, j))],
        out_specs=pl.BlockSpec((row_tile, tile_s), lambda i, j: (i, j)),
        input_output_aliases={1: 0},        # gate in place; x2d is a temporary
        compiler_params=pltpu.CompilerParams(
            dimension_semantics=("parallel", "parallel"),
            vmem_limit_bytes=_stream_vmem_limit((blk, row_tile * 4, blk), cap)),
    )(gate_col, x2d)


# ------------------------------------------------------------------- params --

def init_mmtm_params(key, dim_visual, dim_skeleton, ratio):
    """Deterministic nn.Linear-style init (uniform +/- 1/sqrt(fan_in))."""
    dim = dim_visual + dim_skeleton
    dim_out = int(2 * dim / ratio)

    def linear(k, fan_in, fan_out):
        kw, kb = jax.random.split(k)
        bound = 1.0 / math.sqrt(fan_in)
        w = jax.random.uniform(kw, (fan_out, fan_in), jnp.float32, -bound, bound)
        b = jax.random.uniform(kb, (fan_out,), jnp.float32, -bound, bound)
        return w, b

    k1, k2, k3 = jax.random.split(key, 3)
    w_sq, b_sq = linear(k1, dim, dim_out)            # fc_squeeze: (dim_out, dim)
    w_v, b_v = linear(k2, dim_out, dim_visual)       # fc_visual:  (Cv, dim_out)
    w_s, b_s = linear(k3, dim_out, dim_skeleton)     # fc_skeleton:(Cs, dim_out)
    return dict(w_sq=w_sq, b_sq=b_sq, w_v=w_v, b_v=b_v, w_s=w_s, b_s=b_s,
                dim_visual=dim_visual, dim_skeleton=dim_skeleton,
                dim_out=dim_out)


def prepare_mmtm_params(params):
    """Hoist all per-forward weight slicing / bias reshaping to init time."""
    Cv, Cs = params["dim_visual"], params["dim_skeleton"]
    dim_out = params["dim_out"]
    return dict(
        wsq_v=params["w_sq"][:, :Cv],                 # (dim_out, Cv)
        wsq_s=params["w_sq"][:, Cv:],                 # (dim_out, Cs)
        bsq=params["b_sq"].reshape(dim_out, 1),       # (dim_out, 1)
        w_v=params["w_v"],                            # (Cv, dim_out)
        bv=params["b_v"].reshape(Cv, 1),              # (Cv, 1)
        w_s=params["w_s"],                            # (Cs, dim_out)
        bs=params["b_s"].reshape(Cs, 1),              # (Cs, 1)
        dim_visual=Cv, dim_skeleton=Cs, dim_out=dim_out)


# ------------------------------------------------------------------ forward --

def mmtm_forward(visual, skeleton, params, *, force_streaming=False):
    B, Cv = visual.shape[0], visual.shape[1]
    Cs = skeleton.shape[1]
    Sv = int(math.prod(visual.shape[2:]))
    Ss = int(math.prod(skeleton.shape[2:]))
    dim_out = params["dim_out"]
    inv_sv, inv_ss = 1.0 / Sv, 1.0 / Ss

    wsqv, wsqs, bsq = params["wsq_v"], params["wsq_s"], params["bsq"]
    wv, bv, ws, bs = params["w_v"], params["bv"], params["w_s"], params["bs"]
    weight_args = (wsqv, wsqs, bsq, wv, bv, ws, bs)
    weight_specs = [pl.BlockSpec((dim_out, Cv), lambda b: (0, 0)),
                    pl.BlockSpec((dim_out, Cs), lambda b: (0, 0)),
                    pl.BlockSpec((dim_out, 1), lambda b: (0, 0)),
                    pl.BlockSpec((Cv, dim_out), lambda b: (0, 0)),
                    pl.BlockSpec((Cv, 1), lambda b: (0, 0)),
                    pl.BlockSpec((Cs, dim_out), lambda b: (0, 0)),
                    pl.BlockSpec((Cs, 1), lambda b: (0, 0))]

    cap = _vmem_capacity_bytes()
    weight_bytes = sum(int(w.size) * w.dtype.itemsize for w in weight_args)
    per_batch = (Cv * Sv * visual.dtype.itemsize
                 + Cs * Ss * skeleton.dtype.itemsize)
    fused_need = 4 * per_batch + 2 * weight_bytes + (2 << 20)

    if not force_streaming and fused_need <= int(0.6 * cap):
        # ---- fully fused, VMEM-resident path: one kernel, one HBM pass ------
        out_v3, out_s3 = pl.pallas_call(
            functools.partial(_fused_kernel, inv_sv=inv_sv, inv_ss=inv_ss),
            out_shape=(jax.ShapeDtypeStruct((B, Cv, Sv), visual.dtype),
                       jax.ShapeDtypeStruct((B, Cs, Ss), skeleton.dtype)),
            grid=(B,),
            in_specs=[pl.BlockSpec((None, Cv, Sv), lambda b: (b, 0, 0)),
                      pl.BlockSpec((None, Cs, Ss), lambda b: (b, 0, 0))]
                     + weight_specs,
            out_specs=(pl.BlockSpec((None, Cv, Sv), lambda b: (b, 0, 0)),
                       pl.BlockSpec((None, Cs, Ss), lambda b: (b, 0, 0))),
            compiler_params=pltpu.CompilerParams(
                dimension_semantics=("parallel",),
                vmem_limit_bytes=int(min(int(0.9 * cap),
                                         max(8 << 20, 2 * fused_need)))),
        )(visual.reshape(B, Cv, Sv), skeleton.reshape(B, Cs, Ss), *weight_args)
        return out_v3.reshape(visual.shape), out_s3.reshape(skeleton.shape)

    # ---- streaming 3-phase path (per-batch slice too large for VMEM) --------
    vis2 = visual.reshape(B * Cv, Sv)
    sk2 = skeleton.reshape(B * Cs, Ss)
    rt_v, ts_v = _choose_tiles(B * Cv, Sv, visual.dtype)
    rt_s, ts_s = _choose_tiles(B * Cs, Ss, skeleton.dtype)

    sum_v = _row_sums(vis2, rt_v, ts_v, cap)            # (B*Cv, 1) f32
    sum_s = _row_sums(sk2, rt_s, ts_s, cap)             # (B*Cs, 1) f32

    gate_v, gate_s = pl.pallas_call(
        functools.partial(_gate_mlp_kernel, inv_sv=inv_sv, inv_ss=inv_ss),
        out_shape=(jax.ShapeDtypeStruct((B, Cv, 1), jnp.float32),
                   jax.ShapeDtypeStruct((B, Cs, 1), jnp.float32)),
        grid=(B,),
        in_specs=[pl.BlockSpec((None, Cv, 1), lambda b: (b, 0, 0)),
                  pl.BlockSpec((None, Cs, 1), lambda b: (b, 0, 0))]
                 + weight_specs,
        out_specs=(pl.BlockSpec((None, Cv, 1), lambda b: (b, 0, 0)),
                   pl.BlockSpec((None, Cs, 1), lambda b: (b, 0, 0))),
        compiler_params=pltpu.CompilerParams(dimension_semantics=("parallel",)),
    )(sum_v.reshape(B, Cv, 1), sum_s.reshape(B, Cs, 1), *weight_args)

    out_v = _apply_gate(vis2, gate_v.reshape(B * Cv, 1), rt_v, ts_v, cap)
    out_s = _apply_gate(sk2, gate_s.reshape(B * Cs, 1), rt_s, ts_s, cap)
    return out_v.reshape(visual.shape), out_s.reshape(skeleton.shape)


# ---------------------------------------------------------------- reference --

def mmtm_reference(visual, skeleton, params):
    """Pure-JAX reference mirroring the PyTorch forward (uses raw params)."""
    B, Cv = visual.shape[0], visual.shape[1]
    Cs = skeleton.shape[1]
    sq_v = jnp.mean(visual.reshape(B, Cv, -1), axis=-1)
    sq_s = jnp.mean(skeleton.reshape(B, Cs, -1), axis=-1)
    squeeze = jnp.concatenate([sq_v, sq_s], axis=1)
    exc = jnp.maximum(squeeze @ params["w_sq"].T + params["b_sq"], 0.0)
    gate_v = jax.nn.sigmoid(exc @ params["w_v"].T + params["b_v"])
    gate_s = jax.nn.sigmoid(exc @ params["w_s"].T + params["b_s"])
    gate_v = gate_v.reshape(gate_v.shape + (1,) * (visual.ndim - 2))
    gate_s = gate_s.reshape(gate_s.shape + (1,) * (skeleton.ndim - 2))
    return visual * gate_v, skeleton * gate_s


if __name__ == "__main__":
    key = jax.random.PRNGKey(0)
    k_v1, k_s1, k_v2, k_s2, k_par = jax.random.split(key, 5)

    dim_visual, dim_skeleton, ratio = 4, 8, 4
    raw_params = init_mmtm_params(k_par, dim_visual, dim_skeleton, ratio)
    params = prepare_mmtm_params(raw_params)

    # Case 1: typical small MMTM shapes -> fused single-kernel VMEM path.
    visual = jax.random.normal(k_v1, (2, dim_visual, 16, 16), jnp.float32)   # NCHW
    skeleton = jax.random.normal(k_s1, (2, dim_skeleton, 32), jnp.float32)   # (B,C,L)
    out_v, out_s = mmtm_forward(visual, skeleton, params)
    jax.block_until_ready((out_v, out_s))
    ref_v, ref_s = mmtm_reference(visual, skeleton, raw_params)
    assert out_v.shape == visual.shape and out_s.shape == skeleton.shape
    assert jnp.allclose(out_v, ref_v, atol=1e-5, rtol=1e-5)
    assert jnp.allclose(out_s, ref_s, atol=1e-5, rtol=1e-5)

    # Case 2: streaming (tiled) path, including a ragged spatial extent that
    # exercises the lane-masked tail of the row-sum reduce kernel.
    visual2 = jax.random.normal(k_v2, (2, dim_visual, 200000), jnp.float32)
    skeleton2 = jax.random.normal(k_s2, (2, dim_skeleton, 50), jnp.float32)
    out_v2, out_s2 = mmtm_forward(visual2, skeleton2, params,
                                  force_streaming=True)
    jax.block_until_ready((out_v2, out_s2))
    ref_v2, ref_s2 = mmtm_reference(visual2, skeleton2, raw_params)
    assert jnp.allclose(out_v2, ref_v2, atol=1e-4, rtol=1e-4)
    assert jnp.allclose(out_s2, ref_s2, atol=1e-5, rtol=1e-5)

    print("KERNEL_OK")
</pallas_src>

<mosaic_0001>
module attributes {stable_mosaic.version = 11 : i64} {
  func.func @_fused_kernel(%arg0: i32, %arg1: memref<1x4x256xf32, #tpu.memory_space<vmem>>, %arg2: memref<1x8x32xf32, #tpu.memory_space<vmem>>, %arg3: memref<6x4xf32, #tpu.memory_space<vmem>>, %arg4: memref<6x8xf32, #tpu.memory_space<vmem>>, %arg5: memref<6x1xf32, #tpu.memory_space<vmem>>, %arg6: memref<4x6xf32, #tpu.memory_space<vmem>>, %arg7: memref<4x1xf32, #tpu.memory_space<vmem>>, %arg8: memref<8x6xf32, #tpu.memory_space<vmem>>, %arg9: memref<8x1xf32, #tpu.memory_space<vmem>>, %arg10: memref<1x4x256xf32, #tpu.memory_space<vmem>>, %arg11: memref<1x8x32xf32, #tpu.memory_space<vmem>>) attributes {dimension_semantics = [#tpu.dimension_semantics<parallel>], iteration_bounds = array<i64: 2>, scalar_prefetch = 0 : i64, scratch_operands = 0 : i64, tpu.core_type = #tpu.core_type<tc>, window_params = [{transform_indices = @transform_0, window_bounds = array<i64: 1, 4, 256>}, {transform_indices = @transform_1, window_bounds = array<i64: 1, 8, 32>}, {pipeline_mode = #tpu.pipeline_mode<synchronous>, transform_indices = @transform_2, window_bounds = array<i64: 6, 4>}, {pipeline_mode = #tpu.pipeline_mode<synchronous>, transform_indices = @transform_3, window_bounds = array<i64: 6, 8>}, {pipeline_mode = #tpu.pipeline_mode<synchronous>, transform_indices = @transform_4, window_bounds = array<i64: 6, 1>}, {pipeline_mode = #tpu.pipeline_mode<synchronous>, transform_indices = @transform_5, window_bounds = array<i64: 4, 6>}, {pipeline_mode = #tpu.pipeline_mode<synchronous>, transform_indices = @transform_6, window_bounds = array<i64: 4, 1>}, {pipeline_mode = #tpu.pipeline_mode<synchronous>, transform_indices = @transform_7, window_bounds = array<i64: 8, 6>}, {pipeline_mode = #tpu.pipeline_mode<synchronous>, transform_indices = @transform_8, window_bounds = array<i64: 8, 1>}, {transform_indices = @transform_9, window_bounds = array<i64: 1, 4, 256>}, {transform_indices = @transform_10, window_bounds = array<i64: 1, 8, 32>}]} {
    %c0 = arith.constant 0 : index
    %c0_0 = arith.constant 0 : index
    %c0_1 = arith.constant 0 : index
    %0 = vector.load %arg1[%c0, %c0_0, %c0_1] : memref<1x4x256xf32, #tpu.memory_space<vmem>>, vector<1x4x256xf32>
    %1 = vector.shape_cast %0 : vector<1x4x256xf32> to vector<4x256xf32>
    %c0_2 = arith.constant 0 : index
    %c0_3 = arith.constant 0 : index
    %c0_4 = arith.constant 0 : index
    %2 = vector.load %arg2[%c0_2, %c0_3, %c0_4] : memref<1x8x32xf32, #tpu.memory_space<vmem>>, vector<1x8x32xf32>
    %3 = vector.shape_cast %2 : vector<1x8x32xf32> to vector<8x32xf32>
    %cst = arith.constant dense<0.000000e+00> : vector<4xf32>
    %4 = vector.multi_reduction <add>, %1, %cst [1] : vector<4x256xf32> to vector<4xf32>
    %5 = vector.shape_cast %4 : vector<4xf32> to vector<4x1xf32>
    %cst_5 = arith.constant dense<0.000000e+00> : vector<8xf32>
    %6 = vector.multi_reduction <add>, %3, %cst_5 [1] : vector<8x32xf32> to vector<8xf32>
    %7 = vector.shape_cast %6 : vector<8xf32> to vector<8x1xf32>
    %c0_6 = arith.constant 0 : index
    %c0_7 = arith.constant 0 : index
    %8 = vector.load %arg3[%c0_6, %c0_7] : memref<6x4xf32, #tpu.memory_space<vmem>>, vector<6x4xf32>
    %c0_8 = arith.constant 0 : index
    %c0_9 = arith.constant 0 : index
    %9 = vector.load %arg4[%c0_8, %c0_9] : memref<6x8xf32, #tpu.memory_space<vmem>>, vector<6x8xf32>
    %c0_10 = arith.constant 0 : index
    %c0_11 = arith.constant 0 : index
    %10 = vector.load %arg5[%c0_10, %c0_11] : memref<6x1xf32, #tpu.memory_space<vmem>>, vector<6x1xf32>
    %c0_12 = arith.constant 0 : index
    %c0_13 = arith.constant 0 : index
    %11 = vector.load %arg6[%c0_12, %c0_13] : memref<4x6xf32, #tpu.memory_space<vmem>>, vector<4x6xf32>
    %c0_14 = arith.constant 0 : index
    %c0_15 = arith.constant 0 : index
    %12 = vector.load %arg7[%c0_14, %c0_15] : memref<4x1xf32, #tpu.memory_space<vmem>>, vector<4x1xf32>
    %c0_16 = arith.constant 0 : index
    %c0_17 = arith.constant 0 : index
    %13 = vector.load %arg8[%c0_16, %c0_17] : memref<8x6xf32, #tpu.memory_space<vmem>>, vector<8x6xf32>
    %c0_18 = arith.constant 0 : index
    %c0_19 = arith.constant 0 : index
    %14 = vector.load %arg9[%c0_18, %c0_19] : memref<8x1xf32, #tpu.memory_space<vmem>>, vector<8x1xf32>
    %cst_20 = arith.constant 3.906250e-03 : f32
    %15 = vector.broadcast %cst_20 : f32 to vector<4x1xf32>
    %16 = arith.mulf %5, %15 : vector<4x1xf32>
    %cst_21 = arith.constant dense<0.000000e+00> : vector<6x1xf32>
    %17 = tpu.matmul %8, %16, %cst_21 {dimension_numbers = #tpu.dot_dimension_numbers<[1], [0], [0], [1], [0, 0, 1, 1], [], []>} : vector<6x4xf32>, vector<4x1xf32>, vector<6x1xf32> -> vector<6x1xf32>
    %cst_22 = arith.constant 3.125000e-02 : f32
    %18 = vector.broadcast %cst_22 : f32 to vector<8x1xf32>
    %19 = arith.mulf %7, %18 : vector<8x1xf32>
    %cst_23 = arith.constant dense<0.000000e+00> : vector<6x1xf32>
    %20 = tpu.matmul %9, %19, %cst_23 {dimension_numbers = #tpu.dot_dimension_numbers<[1], [0], [0], [1], [0, 0, 1, 1], [], []>} : vector<6x8xf32>, vector<8x1xf32>, vector<6x1xf32> -> vector<6x1xf32>
    %21 = arith.addf %17, %20 : vector<6x1xf32>
    %22 = arith.addf %21, %10 : vector<6x1xf32>
    %cst_24 = arith.constant 0.000000e+00 : f32
    %23 = vector.broadcast %cst_24 : f32 to vector<6x1xf32>
    %24 = arith.maximumf %22, %23 : vector<6x1xf32>
    %cst_25 = arith.constant dense<0.000000e+00> : vector<4x1xf32>
    %25 = tpu.matmul %11, %24, %cst_25 {dimension_numbers = #tpu.dot_dimension_numbers<[1], [0], [0], [1], [0, 0, 1, 1], [], []>} : vector<4x6xf32>, vector<6x1xf32>, vector<4x1xf32> -> vector<4x1xf32>
    %26 = arith.addf %25, %12 : vector<4x1xf32>
    %27 = arith.negf %26 : vector<4x1xf32>
    %28 = math.exp %27 : vector<4x1xf32>
    %cst_26 = arith.constant 1.000000e+00 : f32
    %29 = vector.broadcast %cst_26 : f32 to vector<4x1xf32>
    %30 = arith.addf %29, %28 : vector<4x1xf32>
    %31 = arith.divf %29, %30 : vector<4x1xf32>
    %cst_27 = arith.constant dense<0.000000e+00> : vector<8x1xf32>
    %32 = tpu.matmul %13, %24, %cst_27 {dimension_numbers = #tpu.dot_dimension_numbers<[1], [0], [0], [1], [0, 0, 1, 1], [], []>} : vector<8x6xf32>, vector<6x1xf32>, vector<8x1xf32> -> vector<8x1xf32>
    %33 = arith.addf %32, %14 : vector<8x1xf32>
    %34 = arith.negf %33 : vector<8x1xf32>
    %35 = math.exp %34 : vector<8x1xf32>
    %cst_28 = arith.constant 1.000000e+00 : f32
    %36 = vector.broadcast %cst_28 : f32 to vector<8x1xf32>
    %37 = arith.addf %36, %35 : vector<8x1xf32>
    %38 = arith.divf %36, %37 : vector<8x1xf32>
    %39 = vector.broadcast %31 : vector<4x1xf32> to vector<4x256xf32>
    %40 = arith.mulf %1, %39 : vector<4x256xf32>
    %c0_29 = arith.constant 0 : index
    %c0_30 = arith.constant 0 : index
    %c0_31 = arith.constant 0 : index
    %41 = vector.load %arg10[%c0_29, %c0_30, %c0_31] : memref<1x4x256xf32, #tpu.memory_space<vmem>>, vector<1x4x256xf32>
    %42 = vector.shape_cast %41 : vector<1x4x256xf32> to vector<4x256xf32>
    %43 = vector.shape_cast %40 : vector<4x256xf32> to vector<1x4x256xf32>
    tpu.vector_store %arg10[%c0_29, %c0_30, %c0_31], %43 {strides = array<i32>} : memref<1x4x256xf32, #tpu.memory_space<vmem>>, vector<1x4x256xf32>,
    %44 = vector.broadcast %38 : vector<8x1xf32> to vector<8x32xf32>
    %45 = arith.mulf %3, %44 : vector<8x32xf32>
    %c0_32 = arith.constant 0 : index
    %c0_33 = arith.constant 0 : index
    %c0_34 = arith.constant 0 : index
    %46 = vector.load %arg11[%c0_32, %c0_33, %c0_34] : memref<1x8x32xf32, #tpu.memory_space<vmem>>, vector<1x8x32xf32>
    %47 = vector.shape_cast %46 : vector<1x8x32xf32> to vector<8x32xf32>
    %48 = vector.shape_cast %45 : vector<8x32xf32> to vector<1x8x32xf32>
    tpu.vector_store %arg11[%c0_32, %c0_33, %c0_34], %48 {strides = array<i32>} : memref<1x8x32xf32, #tpu.memory_space<vmem>>, vector<1x8x32xf32>,
    return
  }
  func.func @transform_0(%arg0: i32) -> (i32, i32, i32) {
    %c0_i32 = arith.constant 0 : i32
    %c0_i32_0 = arith.constant 0 : i32
    %c0_i32_1 = arith.constant 0 : i32
    return %arg0, %c0_i32, %c0_i32_0 : i32, i32, i32
  }
  func.func @transform_1(%arg0: i32) -> (i32, i32, i32) {
    %c0_i32 = arith.constant 0 : i32
    %c0_i32_0 = arith.constant 0 : i32
    %c0_i32_1 = arith.constant 0 : i32
    return %arg0, %c0_i32, %c0_i32_0 : i32, i32, i32
  }
  func.func @transform_2(%arg0: i32) -> (i32, i32) {
    %c0_i32 = arith.constant 0 : i32
    %c0_i32_0 = arith.constant 0 : i32
    %c0_i32_1 = arith.constant 0 : i32
    return %c0_i32, %c0_i32_0 : i32, i32
  }
  func.func @transform_3(%arg0: i32) -> (i32, i32) {
    %c0_i32 = arith.constant 0 : i32
    %c0_i32_0 = arith.constant 0 : i32
    %c0_i32_1 = arith.constant 0 : i32
    return %c0_i32, %c0_i32_0 : i32, i32
  }
  func.func @transform_4(%arg0: i32) -> (i32, i32) {
    %c0_i32 = arith.constant 0 : i32
    %c0_i32_0 = arith.constant 0 : i32
    %c0_i32_1 = arith.constant 0 : i32
    return %c0_i32, %c0_i32_0 : i32, i32
  }
  func.func @transform_5(%arg0: i32) -> (i32, i32) {
    %c0_i32 = arith.constant 0 : i32
    %c0_i32_0 = arith.constant 0 : i32
    %c0_i32_1 = arith.constant 0 : i32
    return %c0_i32, %c0_i32_0 : i32, i32
  }
  func.func @transform_6(%arg0: i32) -> (i32, i32) {
    %c0_i32 = arith.constant 0 : i32
    %c0_i32_0 = arith.constant 0 : i32
    %c0_i32_1 = arith.constant 0 : i32
    return %c0_i32, %c0_i32_0 : i32, i32
  }
  func.func @transform_7(%arg0: i32) -> (i32, i32) {
    %c0_i32 = arith.constant 0 : i32
    %c0_i32_0 = arith.constant 0 : i32
    %c0_i32_1 = arith.constant 0 : i32
    return %c0_i32, %c0_i32_0 : i32, i32
  }
  func.func @transform_8(%arg0: i32) -> (i32, i32) {
    %c0_i32 = arith.constant 0 : i32
    %c0_i32_0 = arith.constant 0 : i32
    %c0_i32_1 = arith.constant 0 : i32
    return %c0_i32, %c0_i32_0 : i32, i32
  }
  func.func @transform_9(%arg0: i32) -> (i32, i32, i32) {
    %c0_i32 = arith.constant 0 : i32
    %c0_i32_0 = arith.constant 0 : i32
    %c0_i32_1 = arith.constant 0 : i32
    return %arg0, %c0_i32, %c0_i32_0 : i32, i32, i32
  }
  func.func @transform_10(%arg0: i32) -> (i32, i32, i32) {
    %c0_i32 = arith.constant 0 : i32
    %c0_i32_0 = arith.constant 0 : i32
    %c0_i32_1 = arith.constant 0 : i32
    return %arg0, %c0_i32, %c0_i32_0 : i32, i32, i32
  }
}

</mosaic_0001>

<bundles_post_ra>
// kernel: tpu_custom_call.1
= control target key start
LH: loop header
LB: loop body
LE: loop exit
PB: predicated region body
PF: predicated region fallthrough
CT: control target
= control target key end

     0   :  { %s1412_s0 = inlined_call_operand.vmem [shape: f32[2,4,256], index: 0, kind: input, shape index: {}]   ;;  %s1413_s1 = inlined_call_operand.vmem [shape: f32[2,8,32], index: 1, kind: input, shape index: {}]   ;;  %s1414_s2 = inlined_call_operand.vmem [shape: f32[6,4], index: 2, kind: input, shape index: {}]   ;;  %s1415_s3 = inlined_call_operand.vmem [shape: f32[6,8], index: 3, kind: input, shape index: {}]   ;;  %s1416_s4 = inlined_call_operand.vmem [shape: f32[6,1], index: 4, kind: input, shape index: {}]   ;;  %s1417_s5 = inlined_call_operand.vmem [shape: f32[4,6], index: 5, kind: input, shape index: {}]   ;;  %s1418_s6 = inlined_call_operand.vmem [shape: f32[4,1], index: 6, kind: input, shape index: {}]   ;;  %s1419_s7 = inlined_call_operand.hbm [shape: f32[8,6], index: 7, kind: input, shape index: {}]   ;;  %s1420_s8 = inlined_call_operand.vmem [shape: f32[8,1], index: 8, kind: input, shape index: {}]   ;;  %s1421_s9 = inlined_call_operand.hbm [shape: f32[2,4,256], index: 9, kind: output, shape index: {0}]   ;;  %s1422_s10 = inlined_call_operand.hbm [shape: f32[2,8,32], index: 10, kind: output, shape index: {1}]  }
   0x1   :  { %1423 = sst [smem:[#allocation11_spill]] %s1412_s0 }
   0x2   :  { %1424 = sst [smem:[#allocation12_spill]] %s1413_s1 }
   0x3   :  { %1425 = sst [smem:[#allocation13_spill]] %s1414_s2 }
   0x4   :  { %1426 = sst [smem:[#allocation14_spill]] %s1415_s3 }
   0x5   :  { %16 = vsyncpa [#allocation3], 0 }
   0x6   :  { %17 = vsyncpa [#allocation4], 0 }
   0x7   :  { %19 = vsyncpa [#allocation4 + $0x1], 0 }
   0x8   :  { %20 = vsyncpa [#allocation7], 0 }
   0x9   :  { %22 = vsyncpa [#allocation7 + $0x1], 0  ;;  %s1219_s13 = smov 0   ;;  %s1221_s14 = smov 0  }
   0xa   :  { %s1223_s15 = smov 0   ;;  %s1225_s16 = smov 0  }
   0xb LB: > { %s1240_s17 = sadd.s32 4294967295, %s1155_s16   ;;  %s908_s18 = sadd.s32 4294967294, %s1155_s16   ;;  %s1155_s16 = sphi %s1225_s16, %s1438_s16   ;;  %s1151_s15 = sphi %s1223_s15, %s1437_s15   ;;  %s1147_s14 = sphi %s1221_s14, %s1436_s14   ;;  %s1143_s13 = sphi %s1219_s13, %s1435_s13  }
   0xc   : > { %s1244_s19 = sadd.s32 1, %s1155_s16   ;;  %s234_s20 = sadd.s32 1, %s1151_s15 }
   0xd   : > { %s231_s21 = ssub.s32 %s1155_s16, %s1244_s19  ;;  %p244_p0 = scmp.ne.s32.totalorder %s1151_s15, %s1147_s14 }
   0xe   : > { %p232_p1 = scmp.eq.s32.totalorder %s231_s21, 0  ;;  %p245_p2 = scmp.eq.s32.totalorder %s1240_s17, 1 }
   0xf   : > { %p250_p3 = scmp.ne.s32.totalorder %s1147_s14, %s1143_s13  ;;  %p251_p4 = scmp.eq.s32.totalorder %s908_s18, 1 }
  0x10   : > { %s1255_s22 = scalar_select %p232_p1, %s1151_s15, %s234_s20  }
  0x11   : > { %p1257_p5 = por %p245_p2, %p244_p0  ;;  %p1261_p6 = por %p251_p4, %p250_p3 }
  0x12   : > { %p909_p7 = scmp.ge.s32.totalorder %s1155_s16, 1  ;;  %p284_p8 = scmp.lt.s32.totalorder %s1155_s16, 3 }
  0x13   : > { %s1428_s24 = scalar_select %p1261_p6, 1, 0 }
  0x14   : > { %p984_p9 = scmp.eq.s32.totalorder %s1240_s17, 0  ;;  %p1268_p10 = pnand %p909_p7, %p284_p8 }
  0x15   : > { %s1157_s26 = smov [#allocation2]  }
  0x16   : > { %s312_s27 = sshll.u32 %s1157_s26, 4  ;;  %p973_p11 = pneg %p1268_p10  ;;  %s313_s27 = int_to_ptr.vmem [resolvable:$true] %s312_s27 }
  0x17   : > { %s1046_s28 = scalar_lea.vmem %s313_s27, 128  ;;  %p1054_p3 = scmp.lt.s32.totalorder %s313_s27, %s313_s27 }
  0x18   : > { %p974_p12 = pnand %p984_p9, %p973_p11  ;;  %p1047_p0 = scmp.ne.s32.totalorder %s313_s27, %s1046_s28 }
  0x19   : > { %p1055_p4 = scmp.lt.s32.totalorder %s1046_s28, %s1046_s28 }
  0x1a   : > { %p1037_p13 = pneg %p974_p12 }
  0x1b   : > { %p1056_p6 = por %p1055_p4, %p1054_p3 }
  0x1c   : > { %p1049_p1 = pnand %p1047_p0, %p1037_p13 }
  0x1e   : > { %p1050_p2 = pneg %p1049_p1 }
  0x20   : > { %p1057_p7 = pnand %p1056_p6, %p1050_p2 }
  0x22   : > { %1060 = shalt.err (!%p1057_p7)
}
  0x23   : > { %976 = dma.hbm_to_vmem [thread:$0]  (!%p974_p12), %s1419_s7, 128, %s313_s27, [#allocation3]  }
  0x24   : > { %343 = sbr.rel (%p1268_p10) target bundleno = 790 (0x316), region = 56 }
  0x29   : > { %1130 = dma.done.wait (%p984_p9), [#allocation3], 128  }
  0x2a   : > { %1132 = vsyncadd (%p984_p9), [#allocation3], 4294967168  ;;  %p390_p8 = scmp.lt.s32.totalorder %s1240_s17, 1  ;;  %s1430_s0 = sld [smem:[#allocation11_spill]]  ;;  %vm404_vm0 = vcmask 1043456   ;;  %vm410_vm1 = vcmask 261120   ;;  %v746_v43 = vlaneseq }
  0x2b   : > { %s1431_s1 = sld [smem:[#allocation12_spill]]  ;;  %v1158_v7 = vmov 0.0   ;;  %vm1159_vm2 = vmmov 0   ;;  %vm497_vm3 = vcmask 31744   ;;  %vm423_vm4 = vcmask 64512   ;;  %v419_v23 = vld [vmem:[#allocation2] sm:$0xff] }
  0x2c   : > { %s391_s11 = scalar_select %p390_p8, %s1240_s17, 1  ;;  %950 = vmatprep.subr.mxu1 %v1158_v7  ;;  %945 = vmatprep.subr.mxu0 %v1158_v7  ;;  %v416_v16 = vld [vmem:[%s1416_s4] sm:$0x3f]  ;;  %vm580_vm5 = vcmask 1045504   ;;  %vm576_vm6 = vcmask 48128   ;;  %v1160_v24 = vmov 0  }
  0x2d   : > { %952 = vmatprep.mubr.msk.f32.mxu1 %vm1159_vm2, %v1158_v7  ;;  %947 = vmatprep.mubr.msk.f32.mxu0 %vm1159_vm2, %v1158_v7  ;;  %s1432_s2 = sld [smem:[#allocation13_spill]]  ;;  %v417_v22 = vld [vmem:[%s1417_s5] sm:$0xf]  ;;  %v1161_v41 = vmov 839922192   ;;  %s1328_s29 = sand.u32 1, %s1147_s14  }
  0x2e   : > { %s935_s12 = sshll.u32 %s391_s11, 3  ;;  %s1433_s3 = sld [smem:[#allocation14_spill]]  ;;  %1024 = vset.pattern.permute.xlu1 %v1160_v24  ;;  %1025 = vset.pattern.permute.xlu0 %v1160_v24  ;;  %v418_v25 = vld [vmem:[%s1418_s6] sm:$0xf]  ;;  %v744_v42 = vunpack.c.l.s4 %v1161_v41  ;;  %v747_v45 = vshrl.u32 %v746_v43, 7 }
  0x2f   : > { %v420_v26 = vld [vmem:[%s1420_s8] sm:$0xff]  ;;  %s914_s30 = sshll.u32 %s1328_s29, 3  ;;  %s936_s11 = sshll.u32 %s1240_s17, 7 }
  0x30   : > { %s394_s21 = scalar_lea.vmem %s1430_s0, %s935_s12  ;;  %v745_v44 = vunpack.c.0.s8 %v744_v42  ;;  %s1332_s20 = scalar_lea.vmem [#allocation6], %s914_s30 }
  0x31   : > { %v1290_v0 = vld [vmem:[%s394_s21] sm:$0xff]  ;;  %s398_s27 = scalar_lea.vmem %s1431_s1, %s935_s12  ;;  %s382_s12 = scalar_lea.vmem [#allocation5], %s914_s30 }
  0x32   : > { %v402_v1 = vcombine.high %v1290_v0, %v1290_v0  ;;  %v405_v2 = vsel %vm404_vm0, %v1290_v0, 0.0  ;;  %v1300_v5 = vld [vmem:[%s398_s27] sm:$0xff]  ;;  %v748_v46 = vsub.s32 %v745_v44, %v747_v45  ;;  %s780_s18 = sshll.u32 %s382_s12, 4  ;;  %s793_s21 = sshll.u32 %s1332_s20, 4  ;;  %s1341_s18 = int_to_ptr.vmem [resolvable:$true] %s780_s18  ;;  %s1349_s21 = int_to_ptr.vmem [resolvable:$true] %s793_s21 }
  0x33   : > { %v411_v6 = vsel %vm410_vm1, %v1300_v5, 0.0  ;;  %v414_v10 = vld [vmem:[%s1432_s2] sm:$0x3f]  ;;  %s1339_s27 = scalar_lea.hbm %s1421_s9, %s936_s11  ;;  %s1347_s30 = scalar_lea.hbm %s1422_s10, %s936_s11 }
  0x34   : > { %v406_v3 = vsel %vm404_vm0, %v402_v1, 0.0  ;;  %v415_v13 = vld [vmem:[%s1433_s3] sm:$0x3f]  ;;  %s761_s0 = scalar_lea.sflag [#allocation4], %s1328_s29  ;;  %s1061_s25 = scalar_lea.vmem %s1341_s18, 128 }
  0x35   : > { %v407_v4 = vadd.f32 %v406_v3, %v405_v2  ;;  %p1062_p6 = scmp.ne.s32.totalorder %s1341_s18, %s1061_s25  ;;  %s1162_s26 = smov [#allocation5]  }
  0x36   : > { %s1065_s1 = sshll.u32 %s1162_s26, 4  ;;  %s1066_s1 = int_to_ptr.vmem [resolvable:$false] %s1065_s1 }
  0x37   : > { %408 = vadd.xlane.f32.xlu0 %v407_v4  ;;  %p1063_p9 = pnand %p1062_p6, %p1257_p5  ;;  %s1067_s2 = scalar_lea.vmem %s1066_s1, 256 }
  0x38   : > { %p1068_p11 = scmp.lt.s32.totalorder %s1341_s18, %s1066_s1  ;;  %p1069_p12 = scmp.lt.s32.totalorder %s1067_s2, %s1061_s25 }
  0x39   : > { %p1064_p10 = pneg %p1063_p9 }
  0x3a   : > { %p1070_p13 = por %p1069_p12, %p1068_p11 }
  0x3b   : > { %412 = vadd.xlane.f32.xlu0 %v411_v6 }
  0x3c   : > { %p1071_p0 = pnand %p1070_p13, %p1064_p10 }
  0xc0   : > { %v409_v8 = vpop.xlane.xlu0 %408 }
  0xc1   : > { %v421_v9 = vmul.f32 0.00390625, %v409_v8 }
  0xc3   : > { %951 = vmatpush3.msk.msra.mxu1 %vm404_vm0, %v421_v9 }
  0xc4   : > { %v413_v11 = vpop.xlane.xlu0 %412  ;;  %953 = vmatmul.mubr.msk.f32.vlgmr.msra.gmra.mxu1 %vm497_vm3, %v414_v10  ;;  %960 = vmatprep.subr.mxu1 %v1158_v7 }
  0xc5   : > { %v422_v12 = vmul.f32 0.03125, %v413_v11  ;;  %962 = vmatprep.mubr.msk.f32.mxu1 %vm1159_vm2, %v1158_v7 }
  0xc7   : > { %946 = vmatpush3.msra.mxu0 %v422_v12 }
  0xc8   : > { %948 = vmatmul.mubr.msk.f32.vlgmr.msra.gmra.mxu0 %vm423_vm4, %v415_v13  ;;  %955 = vmatprep.subr.mxu0 %v1158_v7 }
  0xc9   : > { %957 = vmatprep.mubr.msk.f32.mxu0 %vm1159_vm2, %v1158_v7 }
 0x184   : > { %v570_v14 = vpop.f32.mrf.mxu1 }
 0x186   : > { %v954_v15 = vpop.f32.mrf.mxu1 }
 0x188   : > { %v493_v17 = vpop.f32.mrf.mxu0 }
 0x189   : > { %v571_v18 = vadd.f32 %v570_v14, %v493_v17 }
 0x18a   : > { %v949_v19 = vpop.f32.mrf.mxu0 }
 0x18b   : > { %v574_v20 = vadd.f32 %v571_v18, %v416_v16 }
 0x18d   : > { %v575_v21 = vmax.f32 %v574_v20, 0.0 }
 0x18f   : > { %956 = vmatpush3.msk.msra.mxu0 %vm580_vm5, %v575_v21  ;;  %961 = vmatpush3.msk.msra.mxu1 %vm580_vm5, %v575_v21 }
 0x190   : > { %958 = vmatmul.mubr.msk.f32.vlgmr.msra.gmra.mxu0 %vm576_vm6, %v417_v22  ;;  %963 = vmatmul.mubr.msk.f32.vlgmr.msra.gmra.mxu1 %vm576_vm6, %v419_v23 }
 0x250   : > { %v650_v27 = vpop.f32.mrf.mxu0  ;;  %v729_v28 = vpop.f32.mrf.mxu1 }
 0x251   : > { %v651_v29 = vadd.f32 %v650_v27, %v418_v25  ;;  %v730_v30 = vadd.f32 %v729_v28, %v420_v26 }
 0x252   : > { %v959_v31 = vpop.f32.mrf.mxu0  ;;  %v964_v32 = vpop.f32.mrf.mxu1 }
 0x253   : > { %v924_v33 = vmul.f32 -1.442695, %v651_v29  ;;  %v927_v34 = vmul.f32 -1.442695, %v730_v30 }
 0x255   : > { %1027 = vpow2.f32 %v924_v33 }
 0x256   : > { %1029 = vpow2.f32 %v927_v34 }
 0x262   : > { %v1028_v35 = vpop.eup %1027 }
 0x263   : > { %v1030_v36 = vpop.eup %1029  ;;  %v657_v37 = vadd.f32 1.0, %v1028_v35 }
 0x264   : > { %v736_v38 = vadd.f32 1.0, %v1030_v36 }
 0x265   : > { %1031 = vrcp.f32 %v657_v37 }
 0x266   : > { %1033 = vrcp.f32 %v736_v38 }
 0x272   : > { %v1032_v39 = vpop.eup %1031 }
 0x273   : > { %741 = vperm.xlu1 %1024, %v1032_v39   ;;  %v1034_v40 = vpop.eup %1033 }
 0x277   : > { %755 = vperm.xlu1 %1024, %v1034_v40  }
 0x2ee   : > { %v742_v47 = vpop.permute.xlu1 %741 }
 0x2ef   : > { %v749_v48 = vrot.slane %v742_v47, %v748_v46 }
 0x2f1   : > { %v751_v49 = vmul.f32 %v749_v48, %v1290_v0 }
 0x2f2   : > { %v756_v50 = vpop.permute.xlu1 %755 }
 0x2f3   : > { %v758_v51 = vmul.f32 %v756_v50, %v1300_v5  ;;  %752 = vst [vmem:[%s382_s12] sm:$0xff] %v751_v49 }
 0x2f4   : > { %1074 = shalt.err (!%p1071_p0)
}
 0x2f5   : > { %s1075_s11 = scalar_lea.hbm %s1339_s27, 128  ;;  %s1079_s28 = scalar_lea.hbm %s1421_s9, 256 }
 0x2f6   : > { %p1076_p1 = scmp.ne.s32.totalorder %s1339_s27, %s1075_s11  ;;  %p1080_p4 = scmp.lt.s32.totalorder %s1339_s27, %s1421_s9 }
 0x2f7   : > { %p1081_p7 = scmp.lt.s32.totalorder %s1079_s28, %s1075_s11 }
 0x2f8   : > { %p1077_p2 = pnand %p1076_p1, %p1257_p5 }
 0x2f9   : > { %p1082_p8 = por %p1081_p7, %p1080_p4 }
 0x2fa   : > { %p1078_p3 = pneg %p1077_p2 }
 0x2fc   : > { %p1083_p6 = pnand %p1082_p8, %p1078_p3 }
 0x2fe   : > { %1086 = shalt.err (!%p1083_p6)
}
 0x2ff   : > { %969 = dma.vmem_to_hbm [thread:$0]  (%p1257_p5), %s1341_s18, 128, %s1339_s27, %s761_s0   ;;  %759 = vst.msk [vmem:[%s1332_s20] sm:$0xff] %vm410_vm1, %v758_v51 }
 0x300   : > { %s766_s1 = scalar_lea.sflag [#allocation7], %s1328_s29  ;;  %s1087_s2 = scalar_lea.vmem %s1349_s21, 128 }
 0x301   : > { %p1088_p9 = scmp.ne.s32.totalorder %s1349_s21, %s1087_s2  ;;  %s1163_s3 = smov [#allocation6]  }
 0x302   : > { %s1091_s25 = sshll.u32 %s1163_s3, 4  ;;  %s1092_s25 = int_to_ptr.vmem [resolvable:$false] %s1091_s25 }
 0x303   : > { %p1089_p10 = pnand %p1088_p9, %p1257_p5  ;;  %s1093_s11 = scalar_lea.vmem %s1092_s25, 256 }
 0x304   : > { %p1094_p12 = scmp.lt.s32.totalorder %s1349_s21, %s1092_s25  ;;  %p1095_p13 = scmp.lt.s32.totalorder %s1093_s11, %s1087_s2 }
 0x305   : > { %p1090_p11 = pneg %p1089_p10 }
 0x306   : > { %p1096_p0 = por %p1095_p13, %p1094_p12 }
 0x308   : > { %p1097_p1 = pnand %p1096_p0, %p1090_p11 }
 0x30a   : > { %1100 = shalt.err (!%p1097_p1)
}
 0x30b   : > { %s1101_s0 = scalar_lea.hbm %s1347_s30, 128  ;;  %s1105_s20 = scalar_lea.hbm %s1422_s10, 256 }
 0x30c   : > { %p1102_p2 = scmp.ne.s32.totalorder %s1347_s30, %s1101_s0  ;;  %p1106_p7 = scmp.lt.s32.totalorder %s1347_s30, %s1422_s10 }
 0x30d   : > { %p1107_p8 = scmp.lt.s32.totalorder %s1105_s20, %s1101_s0 }
 0x30e   : > { %p1103_p3 = pnand %p1102_p2, %p1257_p5 }
 0x30f   : > { %p1108_p6 = por %p1107_p8, %p1106_p7 }
 0x310   : > { %p1104_p4 = pneg %p1103_p3 }
 0x312   : > { %p1109_p9 = pnand %p1108_p6, %p1104_p4 }
 0x314   : > { %1112 = shalt.err (!%p1109_p9)
}
 0x315   : > { %970 = dma.vmem_to_hbm [thread:$0]  (%p1257_p5), %s1349_s21, 128, %s1347_s30, %s766_s1  }
 0x316 PF: > { %p986_p10 = scmp.ge.s32.totalorder %s1155_s16, 2  ;;  %s805_s17 = sand.u32 1, %s1143_s13  }
 0x317   : > { %p1434_p11 = scmp.ne.s32.totalorder %s1428_s24, 0  ;;  %s806_s28 = scalar_lea.sflag [#allocation4], %s805_s17 }
 0x319   : > { %p978_p12 = pnand %p986_p10, %p1434_p11 }
 0x31b   : > { %p979_p13 = pneg %p978_p12 }
 0x31d   : > { %1134 = dma.done.wait (%p979_p13), %s806_s28, 128  }
 0x31e   : > { %1136 = vsyncadd (%p979_p13), %s806_s28, 4294967168  ;;  %s815_s26 = scalar_lea.sflag [#allocation7], %s805_s17 }
 0x31f   : > { %1138 = dma.done.wait (%p979_p13), %s815_s26, 128  }
 0x320   : > { %1140 = vsyncadd (%p979_p13), %s815_s26, 4294967168  ;;  %p25_p5 = scmp.ge.s32.totalorder %s1244_s19, 4   ;;  %s1435_s13 = smov %s1147_s14 }
 0x321   : > { %s1436_s14 = smov %s1151_s15  ;;  %s1437_s15 = smov %s1255_s22 }
 0x322   : > { %s1438_s16 = smov %s1244_s19  ;;  %27 = sbr.rel (!%p25_p5) target bundleno = 11 (0xb), region = 116 }
 0x327   :  { %820 = vsyncpa [#allocation3], 1 }
 0x328   :  { %822 = vsyncpa [#allocation3 + $0x1], 1 }
 0x329   :  { %823 = vsyncpa [#allocation4], 1 }
 0x32a   :  { %825 = vsyncpa [#allocation4 + $0x1], 1 }
 0x32b   :  { %826 = vsyncpa [#allocation7], 1 }
 0x32c   :  { %828 = vsyncpa [#allocation7 + $0x1], 1 }

</bundles_post_ra>
